<compile_context>
chip_gen: v6e
topology: v6e:2x2x1
jax: 0.10.0
libtpu: 0.0.40
codegen_flags: <defaults>
</compile_context>

<pallas_src>
from functools import partial

import jax
import jax.numpy as jnp
from jax.experimental import pallas as pl
from jax.experimental.pallas import tpu as pltpu


def _round_up(x, m):
    return ((x + m - 1) // m) * m


# ----------------------------------------------------------------------------
# Pallas kernel: o = PReLU(a @ b + bias), K-reduction over grid axis 2.
# ----------------------------------------------------------------------------

def _mm_bias_prelu_kernel(a_ref, b_ref, bias_ref, alpha_ref, o_ref, acc_ref):
    @pl.when(pl.program_id(2) == 0)
    def _():
        acc_ref[...] = jnp.zeros_like(acc_ref)

    acc_ref[...] += jnp.dot(a_ref[...], b_ref[...],
                            preferred_element_type=jnp.float32)

    @pl.when(pl.program_id(2) == pl.num_programs(2) - 1)
    def _():
        y = acc_ref[...] + bias_ref[...]
        y = jnp.where(y > 0.0, y, alpha_ref[...] * y)   # PReLU (per-column alpha)
        o_ref[...] = y.astype(o_ref.dtype)


def matmul_bias_prelu(a, b, bias, alpha):
    """PReLU(a @ b + bias). a:(M,K) f32, b:(K,N) f32, bias/alpha:(N,) f32.

    bf16 operands / f32 MXU accumulation, fused bias+PReLU epilogue.
    Meant to be called from inside an outer jax.jit.
    """
    M, K = a.shape
    _, N = b.shape

    tm = min(_round_up(M, 8), 256)
    tk = min(_round_up(K, 128), 512)
    tn = min(_round_up(N, 128), 512)
    Mp = _round_up(M, tm)
    Kp = _round_up(K, tk)
    Np = _round_up(N, tn)

    a_p = jnp.pad(a, ((0, Mp - M), (0, Kp - K))).astype(jnp.bfloat16)
    b_p = jnp.pad(b, ((0, Kp - K), (0, Np - N))).astype(jnp.bfloat16)
    bias_p = jnp.pad(bias, (0, Np - N)).reshape(1, Np).astype(jnp.float32)
    alpha_p = jnp.pad(alpha, (0, Np - N)).reshape(1, Np).astype(jnp.float32)

    grid = (Mp // tm, Np // tn, Kp // tk)
    out = pl.pallas_call(
        _mm_bias_prelu_kernel,
        out_shape=jax.ShapeDtypeStruct((Mp, Np), jnp.float32),
        grid_spec=pltpu.PrefetchScalarGridSpec(
            num_scalar_prefetch=0,
            grid=grid,
            in_specs=[
                pl.BlockSpec((tm, tk), lambda i, j, k: (i, k)),
                pl.BlockSpec((tk, tn), lambda i, j, k: (k, j)),
                pl.BlockSpec((1, tn), lambda i, j, k: (0, j)),
                pl.BlockSpec((1, tn), lambda i, j, k: (0, j)),
            ],
            out_specs=pl.BlockSpec((tm, tn), lambda i, j, k: (i, j)),
            scratch_shapes=[pltpu.VMEM((tm, tn), jnp.float32)],
        ),
        compiler_params=pltpu.CompilerParams(
            dimension_semantics=("parallel", "parallel", "arbitrary")),
    )(a_p, b_p, bias_p, alpha_p)
    return out[:M, :N]


# ----------------------------------------------------------------------------
# im2col glue (stride 1, "same" padding) — fuses inside the outer jit.
# ----------------------------------------------------------------------------

def _extract_patches(x, ksize, padding):
    """x:(N,H,W,C) -> (N*H*W, ksize*ksize*C); K ordered (kh, kw, c)."""
    N, H, W, C = x.shape
    x_p = jnp.pad(x, ((0, 0), (padding, padding), (padding, padding), (0, 0)))
    cols = []
    for kh in range(ksize):
        for kw in range(ksize):
            cols.append(x_p[:, kh:kh + H, kw:kw + W, :])
    patches = jnp.stack(cols, axis=3)          # (N, H, W, k*k, C)
    return patches.reshape(N * H * W, ksize * ksize * C)


# ----------------------------------------------------------------------------
# Parameters: deterministic synthetic init, BN folded into weights/bias.
# ----------------------------------------------------------------------------

def build_params(key, c_in, c_red, c_out, eps=1e-5):
    cnt = [0]

    def nk():
        cnt[0] += 1
        return jax.random.fold_in(key, cnt[0])

    def folded_conv(kh, kw, cin, cout):
        fan_in = kh * kw * cin
        w = jax.random.normal(nk(), (kh, kw, cin, cout), jnp.float32) * \
            (2.0 / fan_in) ** 0.5
        b = jax.random.normal(nk(), (cout,), jnp.float32) * 0.05
        # eval-mode BatchNorm running stats / affine params, folded in.
        gamma = 1.0 + 0.1 * jax.random.normal(nk(), (cout,), jnp.float32)
        beta = 0.1 * jax.random.normal(nk(), (cout,), jnp.float32)
        mean = 0.1 * jax.random.normal(nk(), (cout,), jnp.float32)
        var = jax.random.uniform(nk(), (cout,), jnp.float32,
                                 minval=0.5, maxval=1.5)
        scale = gamma / jnp.sqrt(var + eps)
        w_f = (w * scale).reshape(kh * kw * cin, cout)     # (kh,kw,c) K-order
        b_f = (b - mean) * scale + beta
        return w_f, b_f

    c1, c3, c5 = c_out['1x1'], c_out['3x3'], c_out['5x5']
    r3, r5 = c_red['3x3'], c_red['5x5']
    prelu_a = 0.25  # PyTorch nn.PReLU() default (single shared parameter)

    # Fuse the three 1x1 convs (shared input) column-wise into one matmul.
    w_1x1, b_1x1 = folded_conv(1, 1, c_in, c1)
    w_r3, b_r3 = folded_conv(1, 1, c_in, r3)
    w_r5, b_r5 = folded_conv(1, 1, c_in, r5)
    params = {
        'w_red': jnp.concatenate([w_1x1, w_r3, w_r5], axis=1),   # (c_in, c1+r3+r5)
        'b_red': jnp.concatenate([b_1x1, b_r3, b_r5], axis=0),
        'a_red': jnp.concatenate([
            jnp.full((c1,), prelu_a, jnp.float32),
            jnp.full((r3,), prelu_a, jnp.float32),
            jnp.full((r5,), prelu_a, jnp.float32)], axis=0),
    }
    params['w_3x3'], params['b_3x3'] = folded_conv(3, 3, r3, c3)   # (9*r3, c3)
    params['a_3x3'] = jnp.full((c3,), prelu_a, jnp.float32)
    params['w_5x5'], params['b_5x5'] = folded_conv(5, 5, r5, c5)   # (25*r5, c5)
    params['a_5x5'] = jnp.full((c5,), prelu_a, jnp.float32)
    return params


# ----------------------------------------------------------------------------
# Forward pass (single jit over the whole module).
# ----------------------------------------------------------------------------

def make_inception1_forward(c_in, c_red, c_out):
    c1, c3, c5 = c_out['1x1'], c_out['3x3'], c_out['5x5']
    r3, r5 = c_red['3x3'], c_red['5x5']

    @jax.jit
    def forward(x_nchw, params):
        """Input NCHW f32 (N, c_in, H, W); output NCHW (N, c1+c3+c5, H, W)."""
        x = jnp.transpose(x_nchw, (0, 2, 3, 1)).astype(jnp.float32)   # NHWC
        N, H, W, _ = x.shape
        M = N * H * W
        a = x.reshape(M, c_in)

        # All three 1x1 convs (+BN+PReLU) in one lane-dense Pallas matmul.
        red = matmul_bias_prelu(a, params['w_red'],
                                params['b_red'], params['a_red'])
        y_1x1 = red[:, :c1]
        y_r3 = red[:, c1:c1 + r3].reshape(N, H, W, r3)
        y_r5 = red[:, c1 + r3:].reshape(N, H, W, r5)

        # 3x3 branch: im2col + matmul (+BN+PReLU fused in epilogue).
        p3 = _extract_patches(y_r3, 3, 1)                  # (M, 9*r3)
        y_3x3 = matmul_bias_prelu(p3, params['w_3x3'],
                                  params['b_3x3'], params['a_3x3'])

        # 5x5 branch: im2col + matmul (+BN+PReLU fused in epilogue).
        p5 = _extract_patches(y_r5, 5, 2)                  # (M, 25*r5)
        y_5x5 = matmul_bias_prelu(p5, params['w_5x5'],
                                  params['b_5x5'], params['a_5x5'])

        out = jnp.concatenate([
            y_1x1.reshape(N, H, W, c1),
            y_3x3.reshape(N, H, W, c3),
            y_5x5.reshape(N, H, W, c5)], axis=-1)
        return jnp.transpose(out, (0, 3, 1, 2))            # back to NCHW
    return forward


# ----------------------------------------------------------------------------
# Pure-JAX (f32, XLA) reference for a sanity check of the Pallas path.
# ----------------------------------------------------------------------------

def _reference_forward(x_nchw, params, c_in, c_red, c_out):
    c1 = c_out['1x1']
    r3, r5 = c_red['3x3'], c_red['5x5']

    def prelu(y, a):
        return jnp.where(y > 0.0, y, a * y)

    x = jnp.transpose(x_nchw, (0, 2, 3, 1)).astype(jnp.float32)
    N, H, W, _ = x.shape
    M = N * H * W
    a = x.reshape(M, c_in)
    red = prelu(a @ params['w_red'] + params['b_red'], params['a_red'])
    y_1x1 = red[:, :c1]
    y_r3 = red[:, c1:c1 + r3].reshape(N, H, W, r3)
    y_r5 = red[:, c1 + r3:].reshape(N, H, W, r5)
    p3 = _extract_patches(y_r3, 3, 1)
    y_3x3 = prelu(p3 @ params['w_3x3'] + params['b_3x3'], params['a_3x3'])
    p5 = _extract_patches(y_r5, 5, 2)
    y_5x5 = prelu(p5 @ params['w_5x5'] + params['b_5x5'], params['a_5x5'])
    out = jnp.concatenate([
        y_1x1.reshape(N, H, W, c1),
        y_3x3.reshape(N, H, W, c_out['3x3']),
        y_5x5.reshape(N, H, W, c_out['5x5'])], axis=-1)
    return jnp.transpose(out, (0, 3, 1, 2))


if __name__ == "__main__":
    c_in = 4
    c_red = {"3x3": 8, "5x5": 8}
    c_out = {"1x1": 16, "3x3": 16, "5x5": 8}

    params = build_params(jax.random.PRNGKey(42), c_in, c_red, c_out)
    forward = make_inception1_forward(c_in, c_red, c_out)

    x = jax.random.normal(jax.random.PRNGKey(0), (2, c_in, 16, 16), jnp.float32)

    out = forward(x, params)
    out = jax.block_until_ready(out)

    c_total = c_out['1x1'] + c_out['3x3'] + c_out['5x5']
    assert out.shape == (2, c_total, 16, 16), out.shape
    assert bool(jnp.all(jnp.isfinite(out))), "non-finite output"

    # Sanity check vs pure-XLA f32 reference (bf16 matmul => loose tolerance).
    ref = _reference_forward(x, params, c_in, c_red, c_out)
    rel_err = float(jnp.max(jnp.abs(out - ref)) / (jnp.max(jnp.abs(ref)) + 1e-6))
    assert rel_err < 5e-2, f"relative error too large: {rel_err}"

    print("KERNEL_OK")
</pallas_src>

<mosaic_0001>
module attributes {stable_mosaic.version = 11 : i64} {
  func.func @_mm_bias_prelu_kernel(%arg0: i32, %arg1: i32, %arg2: i32, %arg3: memref<256x128xbf16, #tpu.memory_space<vmem>>, %arg4: memref<128x128xbf16, #tpu.memory_space<vmem>>, %arg5: memref<1x128xf32, #tpu.memory_space<vmem>>, %arg6: memref<1x128xf32, #tpu.memory_space<vmem>>, %arg7: memref<256x128xf32, #tpu.memory_space<vmem>>, %arg8: memref<256x128xf32, #tpu.memory_space<vmem>>) attributes {dimension_semantics = [#tpu.dimension_semantics<parallel>, #tpu.dimension_semantics<parallel>, #tpu.dimension_semantics<arbitrary>], iteration_bounds = array<i64: 2, 1, 1>, scalar_prefetch = 0 : i64, scratch_operands = 1 : i64, tpu.core_type = #tpu.core_type<tc>, window_params = [{transform_indices = @transform_0, window_bounds = array<i64: 256, 128>}, {transform_indices = @transform_1, window_bounds = array<i64: 128, 128>}, {transform_indices = @transform_2, window_bounds = array<i64: 1, 128>}, {transform_indices = @transform_3, window_bounds = array<i64: 1, 128>}, {transform_indices = @transform_4, window_bounds = array<i64: 256, 128>}]} {
    %c0_i32 = arith.constant 0 : i32
    %0 = arith.cmpi eq, %arg2, %c0_i32 : i32
    %1 = arith.extui %0 : i1 to i32
    %c0_i32_0 = arith.constant 0 : i32
    %2 = arith.cmpi ne, %1, %c0_i32_0 : i32
    scf.if %2 {
      %cst_10 = arith.constant 0.000000e+00 : f32
      %12 = vector.broadcast %cst_10 : f32 to vector<256x128xf32>
      %c0_11 = arith.constant 0 : index
      %c0_12 = arith.constant 0 : index
      %13 = vector.load %arg8[%c0_11, %c0_12] : memref<256x128xf32, #tpu.memory_space<vmem>>, vector<256x128xf32>
      tpu.vector_store %arg8[%c0_11, %c0_12], %12 {strides = array<i32>} : memref<256x128xf32, #tpu.memory_space<vmem>>, vector<256x128xf32>,
    } else {
    }
    %c0 = arith.constant 0 : index
    %c0_1 = arith.constant 0 : index
    %3 = vector.load %arg8[%c0, %c0_1] : memref<256x128xf32, #tpu.memory_space<vmem>>, vector<256x128xf32>
    %c0_2 = arith.constant 0 : index
    %c0_3 = arith.constant 0 : index
    %4 = vector.load %arg3[%c0_2, %c0_3] : memref<256x128xbf16, #tpu.memory_space<vmem>>, vector<256x128xbf16>
    %c0_4 = arith.constant 0 : index
    %c0_5 = arith.constant 0 : index
    %5 = vector.load %arg4[%c0_4, %c0_5] : memref<128x128xbf16, #tpu.memory_space<vmem>>, vector<128x128xbf16>
    %cst = arith.constant dense<0.000000e+00> : vector<256x128xf32>
    %6 = tpu.matmul %4, %5, %cst {dimension_numbers = #tpu.dot_dimension_numbers<[1], [0], [0], [1], [0, 0, 1, 1], [], []>} : vector<256x128xbf16>, vector<128x128xbf16>, vector<256x128xf32> -> vector<256x128xf32>
    %7 = arith.addf %3, %6 : vector<256x128xf32>
    %c0_6 = arith.constant 0 : index
    %c0_7 = arith.constant 0 : index
    %8 = vector.load %arg8[%c0_6, %c0_7] : memref<256x128xf32, #tpu.memory_space<vmem>>, vector<256x128xf32>
    tpu.vector_store %arg8[%c0_6, %c0_7], %7 {strides = array<i32>} : memref<256x128xf32, #tpu.memory_space<vmem>>, vector<256x128xf32>,
    %c0_i32_8 = arith.constant 0 : i32
    %9 = arith.cmpi eq, %arg2, %c0_i32_8 : i32
    %10 = arith.extui %9 : i1 to i32
    %c0_i32_9 = arith.constant 0 : i32
    %11 = arith.cmpi ne, %10, %c0_i32_9 : i32
    scf.if %11 {
      %c0_10 = arith.constant 0 : index
      %c0_11 = arith.constant 0 : index
      %12 = vector.load %arg8[%c0_10, %c0_11] : memref<256x128xf32, #tpu.memory_space<vmem>>, vector<256x128xf32>
      %c0_12 = arith.constant 0 : index
      %c0_13 = arith.constant 0 : index
      %13 = vector.load %arg5[%c0_12, %c0_13] : memref<1x128xf32, #tpu.memory_space<vmem>>, vector<1x128xf32>
      %14 = vector.broadcast %13 : vector<1x128xf32> to vector<256x128xf32>
      %15 = arith.addf %12, %14 : vector<256x128xf32>
      %cst_14 = arith.constant 0.000000e+00 : f32
      %16 = vector.broadcast %cst_14 : f32 to vector<256x128xf32>
      %17 = arith.cmpf ogt, %15, %16 : vector<256x128xf32>
      %c0_15 = arith.constant 0 : index
      %c0_16 = arith.constant 0 : index
      %18 = vector.load %arg6[%c0_15, %c0_16] : memref<1x128xf32, #tpu.memory_space<vmem>>, vector<1x128xf32>
      %19 = vector.broadcast %18 : vector<1x128xf32> to vector<256x128xf32>
      %20 = arith.mulf %19, %15 : vector<256x128xf32>
      %21 = arith.select %17, %15, %20 : vector<256x128xi1>, vector<256x128xf32>
      %c0_17 = arith.constant 0 : index
      %c0_18 = arith.constant 0 : index
      %22 = vector.load %arg7[%c0_17, %c0_18] : memref<256x128xf32, #tpu.memory_space<vmem>>, vector<256x128xf32>
      tpu.vector_store %arg7[%c0_17, %c0_18], %21 {strides = array<i32>} : memref<256x128xf32, #tpu.memory_space<vmem>>, vector<256x128xf32>,
    } else {
    }
    return
  }
  func.func @transform_0(%arg0: i32, %arg1: i32, %arg2: i32) -> (i32, i32) {
    %c0_i32 = arith.constant 0 : i32
    return %arg0, %arg2 : i32, i32
  }
  func.func @transform_1(%arg0: i32, %arg1: i32, %arg2: i32) -> (i32, i32) {
    %c0_i32 = arith.constant 0 : i32
    return %arg2, %arg1 : i32, i32
  }
  func.func @transform_2(%arg0: i32, %arg1: i32, %arg2: i32) -> (i32, i32) {
    %c0_i32 = arith.constant 0 : i32
    %c0_i32_0 = arith.constant 0 : i32
    return %c0_i32, %arg1 : i32, i32
  }
  func.func @transform_3(%arg0: i32, %arg1: i32, %arg2: i32) -> (i32, i32) {
    %c0_i32 = arith.constant 0 : i32
    %c0_i32_0 = arith.constant 0 : i32
    return %c0_i32, %arg1 : i32, i32
  }
  func.func @transform_4(%arg0: i32, %arg1: i32, %arg2: i32) -> (i32, i32) {
    %c0_i32 = arith.constant 0 : i32
    return %arg0, %arg1 : i32, i32
  }
}

module attributes {stable_mosaic.version = 11 : i64} {
  func.func @_mm_bias_prelu_kernel(%arg0: i32, %arg1: i32, %arg2: i32, %arg3: memref<256x256xbf16, #tpu.memory_space<vmem>>, %arg4: memref<256x128xbf16, #tpu.memory_space<vmem>>, %arg5: memref<1x128xf32, #tpu.memory_space<vmem>>, %arg6: memref<1x128xf32, #tpu.memory_space<vmem>>, %arg7: memref<256x128xf32, #tpu.memory_space<vmem>>, %arg8: memref<256x128xf32, #tpu.memory_space<vmem>>) attributes {dimension_semantics = [#tpu.dimension_semantics<parallel>, #tpu.dimension_semantics<parallel>, #tpu.dimension_semantics<arbitrary>], iteration_bounds = array<i64: 2, 1, 1>, scalar_prefetch = 0 : i64, scratch_operands = 1 : i64, tpu.core_type = #tpu.core_type<tc>, window_params = [{transform_indices = @transform_0, window_bounds = array<i64: 256, 256>}, {transform_indices = @transform_1, window_bounds = array<i64: 256, 128>}, {transform_indices = @transform_2, window_bounds = array<i64: 1, 128>}, {transform_indices = @transform_3, window_bounds = array<i64: 1, 128>}, {transform_indices = @transform_4, window_bounds = array<i64: 256, 128>}]} {
    %c0_i32 = arith.constant 0 : i32
    %0 = arith.cmpi eq, %arg2, %c0_i32 : i32
    %1 = arith.extui %0 : i1 to i32
    %c0_i32_0 = arith.constant 0 : i32
    %2 = arith.cmpi ne, %1, %c0_i32_0 : i32
    scf.if %2 {
      %cst_10 = arith.constant 0.000000e+00 : f32
      %12 = vector.broadcast %cst_10 : f32 to vector<256x128xf32>
      %c0_11 = arith.constant 0 : index
      %c0_12 = arith.constant 0 : index
      %13 = vector.load %arg8[%c0_11, %c0_12] : memref<256x128xf32, #tpu.memory_space<vmem>>, vector<256x128xf32>
      tpu.vector_store %arg8[%c0_11, %c0_12], %12 {strides = array<i32>} : memref<256x128xf32, #tpu.memory_space<vmem>>, vector<256x128xf32>,
    } else {
    }
    %c0 = arith.constant 0 : index
    %c0_1 = arith.constant 0 : index
    %3 = vector.load %arg8[%c0, %c0_1] : memref<256x128xf32, #tpu.memory_space<vmem>>, vector<256x128xf32>
    %c0_2 = arith.constant 0 : index
    %c0_3 = arith.constant 0 : index
    %4 = vector.load %arg3[%c0_2, %c0_3] : memref<256x256xbf16, #tpu.memory_space<vmem>>, vector<256x256xbf16>
    %c0_4 = arith.constant 0 : index
    %c0_5 = arith.constant 0 : index
    %5 = vector.load %arg4[%c0_4, %c0_5] : memref<256x128xbf16, #tpu.memory_space<vmem>>, vector<256x128xbf16>
    %cst = arith.constant dense<0.000000e+00> : vector<256x128xf32>
    %6 = tpu.matmul %4, %5, %cst {dimension_numbers = #tpu.dot_dimension_numbers<[1], [0], [0], [1], [0, 0, 1, 1], [], []>} : vector<256x256xbf16>, vector<256x128xbf16>, vector<256x128xf32> -> vector<256x128xf32>
    %7 = arith.addf %3, %6 : vector<256x128xf32>
    %c0_6 = arith.constant 0 : index
    %c0_7 = arith.constant 0 : index
    %8 = vector.load %arg8[%c0_6, %c0_7] : memref<256x128xf32, #tpu.memory_space<vmem>>, vector<256x128xf32>
    tpu.vector_store %arg8[%c0_6, %c0_7], %7 {strides = array<i32>} : memref<256x128xf32, #tpu.memory_space<vmem>>, vector<256x128xf32>,
    %c0_i32_8 = arith.constant 0 : i32
    %9 = arith.cmpi eq, %arg2, %c0_i32_8 : i32
    %10 = arith.extui %9 : i1 to i32
    %c0_i32_9 = arith.constant 0 : i32
    %11 = arith.cmpi ne, %10, %c0_i32_9 : i32
    scf.if %11 {
      %c0_10 = arith.constant 0 : index
      %c0_11 = arith.constant 0 : index
      %12 = vector.load %arg8[%c0_10, %c0_11] : memref<256x128xf32, #tpu.memory_space<vmem>>, vector<256x128xf32>
      %c0_12 = arith.constant 0 : index
      %c0_13 = arith.constant 0 : index
      %13 = vector.load %arg5[%c0_12, %c0_13] : memref<1x128xf32, #tpu.memory_space<vmem>>, vector<1x128xf32>
      %14 = vector.broadcast %13 : vector<1x128xf32> to vector<256x128xf32>
      %15 = arith.addf %12, %14 : vector<256x128xf32>
      %cst_14 = arith.constant 0.000000e+00 : f32
      %16 = vector.broadcast %cst_14 : f32 to vector<256x128xf32>
      %17 = arith.cmpf ogt, %15, %16 : vector<256x128xf32>
      %c0_15 = arith.constant 0 : index
      %c0_16 = arith.constant 0 : index
      %18 = vector.load %arg6[%c0_15, %c0_16] : memref<1x128xf32, #tpu.memory_space<vmem>>, vector<1x128xf32>
      %19 = vector.broadcast %18 : vector<1x128xf32> to vector<256x128xf32>
      %20 = arith.mulf %19, %15 : vector<256x128xf32>
      %21 = arith.select %17, %15, %20 : vector<256x128xi1>, vector<256x128xf32>
      %c0_17 = arith.constant 0 : index
      %c0_18 = arith.constant 0 : index
      %22 = vector.load %arg7[%c0_17, %c0_18] : memref<256x128xf32, #tpu.memory_space<vmem>>, vector<256x128xf32>
      tpu.vector_store %arg7[%c0_17, %c0_18], %21 {strides = array<i32>} : memref<256x128xf32, #tpu.memory_space<vmem>>, vector<256x128xf32>,
    } else {
    }
    return
  }
  func.func @transform_0(%arg0: i32, %arg1: i32, %arg2: i32) -> (i32, i32) {
    %c0_i32 = arith.constant 0 : i32
    return %arg0, %arg2 : i32, i32
  }
  func.func @transform_1(%arg0: i32, %arg1: i32, %arg2: i32) -> (i32, i32) {
    %c0_i32 = arith.constant 0 : i32
    return %arg2, %arg1 : i32, i32
  }
  func.func @transform_2(%arg0: i32, %arg1: i32, %arg2: i32) -> (i32, i32) {
    %c0_i32 = arith.constant 0 : i32
    %c0_i32_0 = arith.constant 0 : i32
    return %c0_i32, %arg1 : i32, i32
  }
  func.func @transform_3(%arg0: i32, %arg1: i32, %arg2: i32) -> (i32, i32) {
    %c0_i32 = arith.constant 0 : i32
    %c0_i32_0 = arith.constant 0 : i32
    return %c0_i32, %arg1 : i32, i32
  }
  func.func @transform_4(%arg0: i32, %arg1: i32, %arg2: i32) -> (i32, i32) {
    %c0_i32 = arith.constant 0 : i32
    return %arg0, %arg1 : i32, i32
  }
}

</mosaic_0001>

<bundles_post_ra>
// kernel: forward.3
= control target key start
LH: loop header
LB: loop body
LE: loop exit
PB: predicated region body
PF: predicated region fallthrough
CT: control target
= control target key end

     0   :  { %s1343_s15 = smov 0   ;;  %s1345_s16 = smov 0   ;;  %s1530_s0 = inlined_call_operand.vmem [shape: bf16[512,128], index: 0, kind: input, shape index: {}]   ;;  %s1531_s1 = inlined_call_operand.vmem [shape: bf16[128,128], index: 1, kind: input, shape index: {}]   ;;  %s1532_s2 = inlined_call_operand.vmem [shape: f32[1,128], index: 2, kind: input, shape index: {}]   ;;  %s1533_s3 = inlined_call_operand.vmem [shape: f32[1,128], index: 3, kind: input, shape index: {}]   ;;  %s1534_s4 = inlined_call_operand.vmem [shape: f32[512,128], index: 4, kind: output, shape index: {}]  }
   0x1   :  { %s1347_s17 = smov 0  }
   0x2 LB: > { %s33_s18 = sadd.s32 1, %s1312_s16  ;;  %p1125_p0 = scmp.ge.s32.totalorder %s1316_s17, 1  ;;  %s1316_s17 = sphi %s1347_s17, %s14_s17   ;;  %s1312_s16 = sphi %s1345_s16, %s1536_s16   ;;  %s1308_s15 = sphi %s1343_s15, %s1535_s15  }
   0x3   : > { %p35_p1 = scmp.ge.s32.totalorder %s33_s18, 2  ;;  %p221_p2 = scmp.lt.s32.totalorder %s1316_s17, 3 }
   0x5   : > { %s1538_s18 = smov (%p35_p1, %s33_s18), 0  ;;  %p222_p3 = pnand %p1125_p0, %p221_p2 }
   0x6   : > { %s1126_s21 = sshll.u32 (!%p222_p3), %s1308_s15, 5 }
   0x7   : > { %225 = sbr.rel (%p222_p3) target bundleno = 276 (0x114), region = 36  ;;  %p268_p4 = scmp.lt.s32.totalorder (!%p222_p3), %s1126_s21, 63 }
   0xc   : > { %v1270_v0 = vld [vmem:[%s1531_s1 + $0x38] sm:$0xff]   ;;  %v1271_v1 = vld [vmem:[%s1531_s1 + $0x30] sm:$0xff]   ;;  %s1540_s21 = smov (!%p268_p4, %s1126_s21), 63  ;;  %v1272_v2 = vld [vmem:[%s1531_s1 + $0x28] sm:$0xff]  }
   0xd   : > { %1182 = vmatprep.subr.bf16.mxu0 %v1270_v0  ;;  %1230 = vmatprep.subr.bf16.mxu1 %v1270_v0  ;;  %s1127_s26 = sshll.u32 %s1540_s21, 2  ;;  %v1273_v3 = vld [vmem:[%s1531_s1 + $0x20] sm:$0xff]   ;;  %v1274_v6 = vld [vmem:[%s1531_s1 + $0x18] sm:$0xff]   ;;  %v1275_v7 = vld [vmem:[%s1531_s1 + $0x10] sm:$0xff]   ;;  %s1129_s19 = sshll.u32 %s1540_s21, 3 }
   0xe   : > { %1183 = vmatpush3.bf16.msra.mxu0 %v1270_v0  ;;  %1238 = vmatpush3.bf16.msra.mxu1 %v1270_v0  ;;  %s1376_s29 = scalar_lea.vmem %s1530_s0, %s1127_s26  ;;  %v1276_v8 = vld [vmem:[%s1531_s1 + $0x8] sm:$0xff]   ;;  %v1277_v9 = vld [vmem:[%s1531_s1] sm:$0xff]   ;;  %s1425_s25 = scalar_lea.vmem %s1534_s4, %s1129_s19 }
   0xf   : > { %1184 = vmatprep.subr.bf16.mxu0 %v1271_v1  ;;  %1231 = vmatprep.subr.bf16.mxu1 %v1271_v1  ;;  %v1278_v4 = vld [vmem:[%s1376_s29] sm:$0xff]   ;;  %v1280_v10 = vld [vmem:[%s1376_s29 + $0x8] sm:$0xff]   ;;  %v1282_v12 = vld [vmem:[%s1376_s29 + $0x10] sm:$0xff]  }
  0x10   : > { %v1279_v5 = vld [vmem:[%s1376_s29 + $0x40] sm:$0xff]   ;;  %1198 = vmatprep.mubr.bf16.mxu0 %v1278_v4  ;;  %v1281_v11 = vld [vmem:[%s1376_s29 + $0x48] sm:$0xff]   ;;  %v1283_v13 = vld [vmem:[%s1376_s29 + $0x50] sm:$0xff]  }
  0x11   : > { %1214 = vmatprep.mubr.bf16.mxu1 %v1279_v5  ;;  %v1284_v14 = vld [vmem:[%s1376_s29 + $0x18] sm:$0xff]   ;;  %v1286_v16 = vld [vmem:[%s1376_s29 + $0x20] sm:$0xff]   ;;  %v1288_v18 = vld [vmem:[%s1376_s29 + $0x28] sm:$0xff]  }
  0x12   : > { %1185 = vmatpush3.bf16.msra.mxu0 %v1271_v1  ;;  %1239 = vmatpush3.bf16.msra.mxu1 %v1271_v1  ;;  %v1285_v15 = vld [vmem:[%s1376_s29 + $0x58] sm:$0xff]   ;;  %v1287_v17 = vld [vmem:[%s1376_s29 + $0x60] sm:$0xff]   ;;  %v1289_v19 = vld [vmem:[%s1376_s29 + $0x68] sm:$0xff]  }
  0x13   : > { %1186 = vmatprep.subr.bf16.mxu0 %v1272_v2  ;;  %1232 = vmatprep.subr.bf16.mxu1 %v1272_v2  ;;  %v1290_v20 = vld [vmem:[%s1376_s29 + $0x30] sm:$0xff]   ;;  %v1292_v22 = vld [vmem:[%s1376_s29 + $0x38] sm:$0xff]   ;;  %v1412_v24 = vld [vmem:[%s1532_s2] ss:$0 sm:$0xff] }
  0x14   : > { %v1291_v21 = vld [vmem:[%s1376_s29 + $0x70] sm:$0xff]   ;;  %v1293_v23 = vld [vmem:[%s1376_s29 + $0x78] sm:$0xff]   ;;  %v1418_v26 = vld [vmem:[%s1533_s3] ss:$0 sm:$0xff] }
  0x16   : > { %1187 = vmatpush3.bf16.msra.mxu0 %v1272_v2  ;;  %1240 = vmatpush3.bf16.msra.mxu1 %v1272_v2 }
  0x17   : > { %1188 = vmatprep.subr.bf16.mxu0 %v1273_v3  ;;  %1233 = vmatprep.subr.bf16.mxu1 %v1273_v3 }
  0x1a   : > { %1189 = vmatpush3.bf16.msra.mxu0 %v1273_v3  ;;  %1241 = vmatpush3.bf16.msra.mxu1 %v1273_v3 }
  0x1b   : > { %1190 = vmatprep.subr.bf16.mxu0 %v1274_v6  ;;  %1234 = vmatprep.subr.bf16.mxu1 %v1274_v6 }
  0x1e   : > { %1191 = vmatpush3.bf16.msra.mxu0 %v1274_v6  ;;  %1242 = vmatpush3.bf16.msra.mxu1 %v1274_v6 }
  0x1f   : > { %1192 = vmatprep.subr.bf16.mxu0 %v1275_v7  ;;  %1235 = vmatprep.subr.bf16.mxu1 %v1275_v7 }
  0x22   : > { %1193 = vmatpush3.bf16.msra.mxu0 %v1275_v7  ;;  %1243 = vmatpush3.bf16.msra.mxu1 %v1275_v7 }
  0x23   : > { %1194 = vmatprep.subr.bf16.mxu0 %v1276_v8  ;;  %1236 = vmatprep.subr.bf16.mxu1 %v1276_v8 }
  0x26   : > { %1195 = vmatpush3.bf16.msra.mxu0 %v1276_v8  ;;  %1244 = vmatpush3.bf16.msra.mxu1 %v1276_v8 }
  0x27   : > { %1196 = vmatprep.subr.bf16.mxu0 %v1277_v9  ;;  %1237 = vmatprep.subr.bf16.mxu1 %v1277_v9 }
  0x2a   : > { %1197 = vmatpush3.bf16.msra.mxu0 %v1277_v9  ;;  %1245 = vmatpush3.bf16.msra.mxu1 %v1277_v9 }
  0x2d   : > { %1199 = vmatmul.mubr.bf16.vlgmr.msra.gmra.mxu0 %v1280_v10  ;;  %1215 = vmatmul.mubr.bf16.vlgmr.msra.gmra.mxu1 %v1281_v11 }
  0x2e   : > { %1202 = vmatprep.mubr.bf16.mxu0 %v1282_v12  ;;  %1218 = vmatprep.mubr.bf16.mxu1 %v1283_v13 }
  0x35   : > { %1203 = vmatmul.mubr.bf16.gmra.mxu0 %v1284_v14  ;;  %1219 = vmatmul.mubr.bf16.gmra.mxu1 %v1285_v15 }
  0x36   : > { %1206 = vmatprep.mubr.bf16.mxu0 %v1286_v16  ;;  %1222 = vmatprep.mubr.bf16.mxu1 %v1287_v17 }
  0x3d   : > { %1207 = vmatmul.mubr.bf16.gmra.mxu0 %v1288_v18  ;;  %1223 = vmatmul.mubr.bf16.gmra.mxu1 %v1289_v19 }
  0x3e   : > { %1210 = vmatprep.mubr.bf16.mxu0 %v1290_v20  ;;  %1226 = vmatprep.mubr.bf16.mxu1 %v1291_v21 }
  0x45   : > { %1211 = vmatmul.mubr.bf16.gmra.mxu0 %v1292_v22  ;;  %1227 = vmatmul.mubr.bf16.gmra.mxu1 %v1293_v23 }
  0xed   : > { %v1200_v25 = vpop.f32.mrf.mxu0  ;;  %v1216_v27 = vpop.f32.mrf.mxu1 }
  0xee   : > { %v830_v28 = vadd.f32 %v1200_v25, %v1412_v24  ;;  %v846_v29 = vadd.f32 %v1216_v27, %v1412_v24 }
  0xef   : > { %v595_v30 = vpop.f32.mrf.mxu0  ;;  %v659_v31 = vpop.f32.mrf.mxu1 }
  0xf0   : > { %vm862_vm0 = vcmp.gt.f32.partialorder %v830_v28, 0.0  ;;  %v901_v32 = vmul.f32 %v1418_v26, %v830_v28  ;;  %vm878_vm1 = vcmp.gt.f32.partialorder %v846_v29, 0.0  ;;  %v917_v33 = vmul.f32 %v1418_v26, %v846_v29 }
  0xf1   : > { %v828_v34 = vadd.f32 %v1412_v24, %v595_v30  ;;  %v844_v35 = vadd.f32 %v1412_v24, %v659_v31  ;;  %v1201_v36 = vpop.f32.mrf.mxu0  ;;  %v1217_v37 = vpop.f32.mrf.mxu1 }
  0xf2   : > { %v933_v38 = vsel %vm862_vm0, %v830_v28, %v901_v32  ;;  %v949_v39 = vsel %vm878_vm1, %v846_v29, %v917_v33  ;;  %v831_v40 = vadd.f32 %v1201_v36, %v1412_v24  ;;  %v847_v41 = vadd.f32 %v1217_v37, %v1412_v24 }
  0xf3   : > { %965 = vst [vmem:[%s1425_s25 + $0x10] sm:$0xff] %v933_v38  ;;  %981 = vst [vmem:[%s1425_s25 + $0x90] sm:$0xff] %v949_v39  ;;  %vm860_vm2 = vcmp.gt.f32.partialorder %v828_v34, 0.0  ;;  %v899_v42 = vmul.f32 %v1418_v26, %v828_v34  ;;  %vm876_vm3 = vcmp.gt.f32.partialorder %v844_v35, 0.0  ;;  %v915_v43 = vmul.f32 %v1418_v26, %v844_v35  ;;  %v598_v44 = vpop.f32.mrf.mxu0  ;;  %v662_v45 = vpop.f32.mrf.mxu1 }
  0xf4   : > { %vm863_vm4 = vcmp.gt.f32.partialorder %v831_v40, 0.0  ;;  %v902_v46 = vmul.f32 %v1418_v26, %v831_v40  ;;  %vm879_vm5 = vcmp.gt.f32.partialorder %v847_v41, 0.0  ;;  %v918_v47 = vmul.f32 %v1418_v26, %v847_v41 }
  0xf5   : > { %v931_v48 = vsel %vm860_vm2, %v828_v34, %v899_v42  ;;  %v947_v49 = vsel %vm876_vm3, %v844_v35, %v915_v43  ;;  %v829_v50 = vadd.f32 %v1412_v24, %v598_v44  ;;  %v845_v51 = vadd.f32 %v1412_v24, %v662_v45  ;;  %v1204_v52 = vpop.f32.mrf.mxu0  ;;  %v1220_v53 = vpop.f32.mrf.mxu1 }
  0xf6   : > { %963 = vst [vmem:[%s1425_s25] sm:$0xff] %v931_v48  ;;  %979 = vst [vmem:[%s1425_s25 + $0x80] sm:$0xff] %v947_v49  ;;  %v934_v54 = vsel %vm863_vm4, %v831_v40, %v902_v46  ;;  %v950_v55 = vsel %vm879_vm5, %v847_v41, %v918_v47  ;;  %v834_v56 = vadd.f32 %v1204_v52, %v1412_v24 }
  0xf7   : > { %v850_v57 = vadd.f32 %v1220_v53, %v1412_v24  ;;  %966 = vst [vmem:[%s1425_s25 + $0x18] sm:$0xff] %v934_v54  ;;  %982 = vst [vmem:[%s1425_s25 + $0x98] sm:$0xff] %v950_v55  ;;  %vm861_vm6 = vcmp.gt.f32.partialorder %v829_v50, 0.0  ;;  %v900_v58 = vmul.f32 %v1418_v26, %v829_v50  ;;  %vm877_vm7 = vcmp.gt.f32.partialorder %v845_v51, 0.0  ;;  %v611_v60 = vpop.f32.mrf.mxu0  ;;  %v675_v61 = vpop.f32.mrf.mxu1 }
  0xf8   : > { %v916_v59 = vmul.f32 %v1418_v26, %v845_v51  ;;  %vm866_vm8 = vcmp.gt.f32.partialorder %v834_v56, 0.0  ;;  %v905_v62 = vmul.f32 %v1418_v26, %v834_v56  ;;  %v832_v2 = vadd.f32 %v1412_v24, %v611_v60 }
  0xf9   : > { %vm882_vm9 = vcmp.gt.f32.partialorder %v850_v57, 0.0  ;;  %v921_v63 = vmul.f32 %v1418_v26, %v850_v57  ;;  %v932_v0 = vsel %vm861_vm6, %v829_v50, %v900_v58  ;;  %v848_v3 = vadd.f32 %v1412_v24, %v675_v61  ;;  %v1205_v4 = vpop.f32.mrf.mxu0  ;;  %v1221_v5 = vpop.f32.mrf.mxu1 }
  0xfa   : > { %v948_v1 = vsel %vm877_vm7, %v845_v51, %v916_v59  ;;  %964 = vst [vmem:[%s1425_s25 + $0x8] sm:$0xff] %v932_v0  ;;  %v937_v6 = vsel %vm866_vm8, %v834_v56, %v905_v62  ;;  %v835_v8 = vadd.f32 %v1205_v4, %v1412_v24  ;;  %v851_v9 = vadd.f32 %v1221_v5, %v1412_v24 }
  0xfb   : > { %980 = vst [vmem:[%s1425_s25 + $0x88] sm:$0xff] %v948_v1  ;;  %v953_v7 = vsel %vm882_vm9, %v850_v57, %v921_v63  ;;  %969 = vst [vmem:[%s1425_s25 + $0x30] sm:$0xff] %v937_v6  ;;  %vm864_vm10 = vcmp.gt.f32.partialorder %v832_v2, 0.0  ;;  %v903_v10 = vmul.f32 %v1418_v26, %v832_v2  ;;  %vm880_vm11 = vcmp.gt.f32.partialorder %v848_v3, 0.0  ;;  %v614_v12 = vpop.f32.mrf.mxu0  ;;  %v678_v13 = vpop.f32.mrf.mxu1 }
  0xfc   : > { %985 = vst [vmem:[%s1425_s25 + $0xb0] sm:$0xff] %v953_v7  ;;  %v919_v11 = vmul.f32 %v1418_v26, %v848_v3  ;;  %vm867_vm12 = vcmp.gt.f32.partialorder %v835_v8, 0.0  ;;  %v906_v14 = vmul.f32 %v1418_v26, %v835_v8  ;;  %vm883_vm13 = vcmp.gt.f32.partialorder %v851_v9, 0.0 }
  0xfd   : > { %v922_v15 = vmul.f32 %v1418_v26, %v851_v9  ;;  %v935_v16 = vsel %vm864_vm10, %v832_v2, %v903_v10  ;;  %v833_v18 = vadd.f32 %v1412_v24, %v614_v12  ;;  %v849_v19 = vadd.f32 %v1412_v24, %v678_v13  ;;  %v1208_v20 = vpop.f32.mrf.mxu0  ;;  %v1224_v21 = vpop.f32.mrf.mxu1 }
  0xfe   : > { %v951_v17 = vsel %vm880_vm11, %v848_v3, %v919_v11  ;;  %967 = vst [vmem:[%s1425_s25 + $0x20] sm:$0xff] %v935_v16  ;;  %v938_v22 = vsel %vm867_vm12, %v835_v8, %v906_v14  ;;  %v838_v25 = vadd.f32 %v1208_v20, %v1412_v24  ;;  %v854_v27 = vadd.f32 %v1224_v21, %v1412_v24 }
  0xff   : > { %983 = vst [vmem:[%s1425_s25 + $0xa0] sm:$0xff] %v951_v17  ;;  %v954_v23 = vsel %vm883_vm13, %v851_v9, %v922_v15  ;;  %970 = vst [vmem:[%s1425_s25 + $0x38] sm:$0xff] %v938_v22  ;;  %vm865_vm14 = vcmp.gt.f32.partialorder %v833_v18, 0.0  ;;  %v904_v28 = vmul.f32 %v1418_v26, %v833_v18  ;;  %vm881_vm15 = vcmp.gt.f32.partialorder %v849_v19, 0.0  ;;  %v627_v30 = vpop.f32.mrf.mxu0  ;;  %v691_v31 = vpop.f32.mrf.mxu1 }
 0x100   : > { %986 = vst [vmem:[%s1425_s25 + $0xb8] sm:$0xff] %v954_v23  ;;  %v920_v29 = vmul.f32 %v1418_v26, %v849_v19  ;;  %vm870_vm0 = vcmp.gt.f32.partialorder %v838_v25, 0.0  ;;  %v909_v32 = vmul.f32 %v1418_v26, %v838_v25  ;;  %vm886_vm1 = vcmp.gt.f32.partialorder %v854_v27, 0.0 }
 0x101   : > { %v925_v33 = vmul.f32 %v1418_v26, %v854_v27  ;;  %v936_v34 = vsel %vm865_vm14, %v833_v18, %v904_v28  ;;  %v836_v36 = vadd.f32 %v1412_v24, %v627_v30  ;;  %v852_v37 = vadd.f32 %v1412_v24, %v691_v31  ;;  %v1209_v38 = vpop.f32.mrf.mxu0  ;;  %v1225_v39 = vpop.f32.mrf.mxu1 }
 0x102   : > { %v952_v35 = vsel %vm881_vm15, %v849_v19, %v920_v29  ;;  %968 = vst [vmem:[%s1425_s25 + $0x28] sm:$0xff] %v936_v34  ;;  %v941_v40 = vsel %vm870_vm0, %v838_v25, %v909_v32  ;;  %v839_v42 = vadd.f32 %v1209_v38, %v1412_v24  ;;  %v855_v43 = vadd.f32 %v1225_v39, %v1412_v24 }
 0x103   : > { %984 = vst [vmem:[%s1425_s25 + $0xa8] sm:$0xff] %v952_v35  ;;  %v957_v41 = vsel %vm886_vm1, %v854_v27, %v925_v33  ;;  %973 = vst [vmem:[%s1425_s25 + $0x50] sm:$0xff] %v941_v40  ;;  %vm868_vm2 = vcmp.gt.f32.partialorder %v836_v36, 0.0  ;;  %v907_v44 = vmul.f32 %v1418_v26, %v836_v36  ;;  %vm884_vm3 = vcmp.gt.f32.partialorder %v852_v37, 0.0  ;;  %v630_v46 = vpop.f32.mrf.mxu0  ;;  %v694_v47 = vpop.f32.mrf.mxu1 }
 0x104   : > { %989 = vst [vmem:[%s1425_s25 + $0xd0] sm:$0xff] %v957_v41  ;;  %v923_v45 = vmul.f32 %v1418_v26, %v852_v37  ;;  %vm871_vm4 = vcmp.gt.f32.partialorder %v839_v42, 0.0  ;;  %v910_v48 = vmul.f32 %v1418_v26, %v839_v42  ;;  %vm887_vm5 = vcmp.gt.f32.partialorder %v855_v43, 0.0 }
 0x105   : > { %v926_v49 = vmul.f32 %v1418_v26, %v855_v43  ;;  %v939_v50 = vsel %vm868_vm2, %v836_v36, %v907_v44  ;;  %v837_v52 = vadd.f32 %v1412_v24, %v630_v46  ;;  %v853_v53 = vadd.f32 %v1412_v24, %v694_v47  ;;  %v1212_v54 = vpop.f32.mrf.mxu0  ;;  %v1228_v55 = vpop.f32.mrf.mxu1 }
 0x106   : > { %v955_v51 = vsel %vm884_vm3, %v852_v37, %v923_v45  ;;  %971 = vst [vmem:[%s1425_s25 + $0x40] sm:$0xff] %v939_v50  ;;  %v942_v56 = vsel %vm871_vm4, %v839_v42, %v910_v48  ;;  %v842_v58 = vadd.f32 %v1212_v54, %v1412_v24  ;;  %v858_v59 = vadd.f32 %v1228_v55, %v1412_v24 }
 0x107   : > { %987 = vst [vmem:[%s1425_s25 + $0xc0] sm:$0xff] %v955_v51  ;;  %v958_v57 = vsel %vm887_vm5, %v855_v43, %v926_v49  ;;  %974 = vst [vmem:[%s1425_s25 + $0x58] sm:$0xff] %v942_v56  ;;  %vm869_vm6 = vcmp.gt.f32.partialorder %v837_v52, 0.0  ;;  %v908_v60 = vmul.f32 %v1418_v26, %v837_v52  ;;  %vm885_vm7 = vcmp.gt.f32.partialorder %v853_v53, 0.0  ;;  %v643_v62 = vpop.f32.mrf.mxu0  ;;  %v707_v63 = vpop.f32.mrf.mxu1 }
 0x108   : > { %990 = vst [vmem:[%s1425_s25 + $0xd8] sm:$0xff] %v958_v57  ;;  %v924_v61 = vmul.f32 %v1418_v26, %v853_v53  ;;  %vm874_vm8 = vcmp.gt.f32.partialorder %v842_v58, 0.0  ;;  %v913_v0 = vmul.f32 %v1418_v26, %v842_v58  ;;  %vm890_vm9 = vcmp.gt.f32.partialorder %v858_v59, 0.0 }
 0x109   : > { %v929_v1 = vmul.f32 %v1418_v26, %v858_v59  ;;  %v940_v2 = vsel %vm869_vm6, %v837_v52, %v908_v60  ;;  %v840_v4 = vadd.f32 %v1412_v24, %v643_v62  ;;  %v856_v5 = vadd.f32 %v1412_v24, %v707_v63  ;;  %v1213_v6 = vpop.f32.mrf.mxu0  ;;  %v1229_v7 = vpop.f32.mrf.mxu1 }
 0x10a   : > { %v956_v3 = vsel %vm885_vm7, %v853_v53, %v924_v61  ;;  %972 = vst [vmem:[%s1425_s25 + $0x48] sm:$0xff] %v940_v2  ;;  %v945_v8 = vsel %vm874_vm8, %v842_v58, %v913_v0  ;;  %v843_v10 = vadd.f32 %v1213_v6, %v1412_v24  ;;  %v859_v11 = vadd.f32 %v1229_v7, %v1412_v24 }
 0x10b   : > { %988 = vst [vmem:[%s1425_s25 + $0xc8] sm:$0xff] %v956_v3  ;;  %v961_v9 = vsel %vm890_vm9, %v858_v59, %v929_v1  ;;  %977 = vst [vmem:[%s1425_s25 + $0x70] sm:$0xff] %v945_v8  ;;  %vm872_vm10 = vcmp.gt.f32.partialorder %v840_v4, 0.0  ;;  %v911_v12 = vmul.f32 %v1418_v26, %v840_v4  ;;  %vm888_vm11 = vcmp.gt.f32.partialorder %v856_v5, 0.0  ;;  %v646_v14 = vpop.f32.mrf.mxu0  ;;  %v710_v15 = vpop.f32.mrf.mxu1 }
 0x10c   : > { %993 = vst [vmem:[%s1425_s25 + $0xf0] sm:$0xff] %v961_v9  ;;  %v927_v13 = vmul.f32 %v1418_v26, %v856_v5  ;;  %vm875_vm12 = vcmp.gt.f32.partialorder %v843_v10, 0.0  ;;  %v914_v16 = vmul.f32 %v1418_v26, %v843_v10  ;;  %vm891_vm13 = vcmp.gt.f32.partialorder %v859_v11, 0.0 }
 0x10d   : > { %v930_v17 = vmul.f32 %v1418_v26, %v859_v11  ;;  %v943_v18 = vsel %vm872_vm10, %v840_v4, %v911_v12  ;;  %v841_v20 = vadd.f32 %v1412_v24, %v646_v14  ;;  %v857_v21 = vadd.f32 %v1412_v24, %v710_v15 }
 0x10e   : > { %v959_v19 = vsel %vm888_vm11, %v856_v5, %v927_v13  ;;  %975 = vst [vmem:[%s1425_s25 + $0x60] sm:$0xff] %v943_v18  ;;  %v946_v22 = vsel %vm875_vm12, %v843_v10, %v914_v16 }
 0x10f   : > { %991 = vst [vmem:[%s1425_s25 + $0xe0] sm:$0xff] %v959_v19  ;;  %v962_v23 = vsel %vm891_vm13, %v859_v11, %v930_v17  ;;  %978 = vst [vmem:[%s1425_s25 + $0x78] sm:$0xff] %v946_v22  ;;  %vm873_vm14 = vcmp.gt.f32.partialorder %v841_v20, 0.0  ;;  %v912_v25 = vmul.f32 %v1418_v26, %v841_v20  ;;  %vm889_vm15 = vcmp.gt.f32.partialorder %v857_v21, 0.0 }
 0x110   : > { %994 = vst [vmem:[%s1425_s25 + $0xf8] sm:$0xff] %v962_v23  ;;  %v928_v27 = vmul.f32 %v1418_v26, %v857_v21 }
 0x111   : > { %v944_v28 = vsel %vm873_vm14, %v841_v20, %v912_v25 }
 0x112   : > { %v960_v29 = vsel %vm889_vm15, %v857_v21, %v928_v27  ;;  %976 = vst [vmem:[%s1425_s25 + $0x68] sm:$0xff] %v944_v28 }
 0x113   : > { %992 = vst [vmem:[%s1425_s25 + $0xe8] sm:$0xff] %v960_v29 }
 0x114 PF: > { %s14_s17 = sadd.s32 1, %s1316_s17   ;;  %s1535_s15 = smov %s1312_s16 }
 0x115   : > { %p11_p5 = scmp.ge.s32.totalorder %s14_s17, 4   ;;  %s1536_s16 = smov %s1538_s18 }
 0x117   :  { %13 = sbr.rel (!%p11_p5) target bundleno = 2 (0x2), region = 83 }

// kernel: forward.5
= control target key start
LH: loop header
LB: loop body
LE: loop exit
PB: predicated region body
PF: predicated region fallthrough
CT: control target
= control target key end

     0   :  { %s1588_s15 = smov 0   ;;  %s1590_s16 = smov 0   ;;  %s1818_s0 = inlined_call_operand.vmem [shape: bf16[512,256], index: 0, kind: input, shape index: {}]   ;;  %s1819_s1 = inlined_call_operand.vmem [shape: bf16[256,128], index: 1, kind: input, shape index: {}]   ;;  %s1820_s2 = inlined_call_operand.vmem [shape: f32[1,128], index: 2, kind: input, shape index: {}]   ;;  %s1821_s3 = inlined_call_operand.vmem [shape: f32[1,128], index: 3, kind: input, shape index: {}]   ;;  %s1822_s4 = inlined_call_operand.vmem [shape: f32[512,128], index: 4, kind: output, shape index: {}]  }
   0x1   :  { %s1592_s17 = smov 0  }
   0x2 LB: > { %s33_s18 = sadd.s32 1, %s1557_s16  ;;  %p1264_p0 = scmp.ge.s32.totalorder %s1561_s17, 1  ;;  %s1561_s17 = sphi %s1592_s17, %s14_s17   ;;  %s1557_s16 = sphi %s1590_s16, %s1824_s16   ;;  %s1553_s15 = sphi %s1588_s15, %s1823_s15  }
   0x3   : > { %p35_p1 = scmp.ge.s32.totalorder %s33_s18, 2  ;;  %p224_p2 = scmp.lt.s32.totalorder %s1561_s17, 3 }
   0x5   : > { %s1826_s18 = smov (%p35_p1, %s33_s18), 0  ;;  %p225_p3 = pnand %p1264_p0, %p224_p2 }
   0x6   : > { %s1265_s21 = sshll.u32 (!%p225_p3), %s1553_s15, 5 }
   0x7   : > { %228 = sbr.rel (%p225_p3) target bundleno = 309 (0x135), region = 36  ;;  %p274_p4 = scmp.lt.s32.totalorder (!%p225_p3), %s1265_s21, 63 }
   0xc   : > { %v1475_v0 = vld [vmem:[%s1819_s1 + $0x78] sm:$0xff]   ;;  %v1477_v2 = vld [vmem:[%s1819_s1 + $0x70] sm:$0xff]   ;;  %v1479_v4 = vld [vmem:[%s1819_s1 + $0x68] sm:$0xff]   ;;  %s1828_s21 = smov (!%p274_p4, %s1265_s21), 63 }
   0xd   : > { %v1476_v1 = vld [vmem:[%s1819_s1 + $0x38] sm:$0xff]   ;;  %1323 = vmatprep.subr.bf16.mxu0 %v1475_v0  ;;  %1435 = vmatprep.subr.bf16.mxu1 %v1475_v0  ;;  %v1478_v3 = vld [vmem:[%s1819_s1 + $0x30] sm:$0xff]   ;;  %v1480_v5 = vld [vmem:[%s1819_s1 + $0x28] sm:$0xff]   ;;  %s1322_s10 = sshll.u32 %s1828_s21, 3 }
   0xe   : > { %1324 = vmatpush3.bf16.msra.mxu0 %v1476_v1  ;;  %1443 = vmatpush3.bf16.msra.mxu1 %v1476_v1  ;;  %v1481_v6 = vld [vmem:[%s1819_s1 + $0x60] sm:$0xff]   ;;  %v1483_v8 = vld [vmem:[%s1819_s1 + $0x58] sm:$0xff]   ;;  %s1641_s15 = scalar_lea.vmem %s1818_s0, %s1322_s10  ;;  %v1485_v10 = vld [vmem:[%s1819_s1 + $0x50] sm:$0xff]  }
   0xf   : > { %1325 = vmatprep.subr.bf16.mxu0 %v1477_v2  ;;  %1436 = vmatprep.subr.bf16.mxu1 %v1477_v2  ;;  %v1482_v7 = vld [vmem:[%s1819_s1 + $0x20] sm:$0xff]   ;;  %v1484_v9 = vld [vmem:[%s1819_s1 + $0x18] sm:$0xff]   ;;  %v1486_v13 = vld [vmem:[%s1819_s1 + $0x10] sm:$0xff]  }
  0x10   : > { %v1493_v11 = vld [vmem:[%s1641_s15 + $0x4] ss:$8 sps:$4 sm:$0xff]   ;;  %v1491_v18 = vld [vmem:[%s1641_s15] ss:$8 sps:$4 sm:$0xff]   ;;  %v1497_v20 = vld [vmem:[%s1641_s15 + $0x14] ss:$8 sps:$4 sm:$0xff]  }
  0x11   : > { %v1496_v12 = vld [vmem:[%s1641_s15 + $0x84] ss:$8 sps:$4 sm:$0xff]   ;;  %729 = vmatprep.mubr.bf16.mxu0 %v1493_v11  ;;  %v1494_v19 = vld [vmem:[%s1641_s15 + $0x80] ss:$8 sps:$4 sm:$0xff]   ;;  %v1499_v21 = vld [vmem:[%s1641_s15 + $0x94] ss:$8 sps:$4 sm:$0xff]  }
  0x12   : > { %1326 = vmatpush3.bf16.msra.mxu0 %v1478_v3  ;;  %1444 = vmatpush3.bf16.msra.mxu1 %v1478_v3  ;;  %v1487_v14 = vld [vmem:[%s1819_s1 + $0x48] sm:$0xff]   ;;  %v1489_v16 = vld [vmem:[%s1819_s1 + $0x40] sm:$0xff]   ;;  %v1501_v22 = vld [vmem:[%s1641_s15 + $0x10] ss:$8 sps:$4 sm:$0xff]  }
  0x13   : > { %1327 = vmatprep.subr.bf16.mxu0 %v1479_v4  ;;  %1437 = vmatprep.subr.bf16.mxu1 %v1479_v4  ;;  %v1488_v15 = vld [vmem:[%s1819_s1 + $0x8] sm:$0xff]   ;;  %v1490_v17 = vld [vmem:[%s1819_s1] sm:$0xff]   ;;  %v1502_v23 = vld [vmem:[%s1641_s15 + $0x90] ss:$8 sps:$4 sm:$0xff]  }
  0x14   : > { %793 = vmatprep.mubr.bf16.mxu1 %v1496_v12  ;;  %v1503_v24 = vld [vmem:[%s1641_s15 + $0x24] ss:$8 sps:$4 sm:$0xff]   ;;  %v1507_v26 = vld [vmem:[%s1641_s15 + $0x20] ss:$8 sps:$4 sm:$0xff]   ;;  %v1509_v28 = vld [vmem:[%s1641_s15 + $0x34] ss:$8 sps:$4 sm:$0xff]  }
  0x15   : > { %v1505_v25 = vld [vmem:[%s1641_s15 + $0xa4] ss:$8 sps:$4 sm:$0xff]   ;;  %v1508_v27 = vld [vmem:[%s1641_s15 + $0xa0] ss:$8 sps:$4 sm:$0xff]   ;;  %v1511_v29 = vld [vmem:[%s1641_s15 + $0xb4] ss:$8 sps:$4 sm:$0xff]  }
  0x16   : > { %1328 = vmatpush3.bf16.msra.mxu0 %v1480_v5  ;;  %1445 = vmatpush3.bf16.msra.mxu1 %v1480_v5  ;;  %v1513_v30 = vld [vmem:[%s1641_s15 + $0x30] ss:$8 sps:$4 sm:$0xff]   ;;  %v1515_v32 = vld [vmem:[%s1641_s15 + $0x44] ss:$8 sps:$4 sm:$0xff]   ;;  %v1519_v34 = vld [vmem:[%s1641_s15 + $0x40] ss:$8 sps:$4 sm:$0xff]  }
  0x17   : > { %1329 = vmatprep.subr.bf16.mxu0 %v1481_v6  ;;  %1438 = vmatprep.subr.bf16.mxu1 %v1481_v6  ;;  %v1514_v31 = vld [vmem:[%s1641_s15 + $0xb0] ss:$8 sps:$4 sm:$0xff]   ;;  %v1517_v33 = vld [vmem:[%s1641_s15 + $0xc4] ss:$8 sps:$4 sm:$0xff]   ;;  %v1520_v35 = vld [vmem:[%s1641_s15 + $0xc0] ss:$8 sps:$4 sm:$0xff]  }
  0x18   : > { %v1521_v36 = vld [vmem:[%s1641_s15 + $0x54] ss:$8 sps:$4 sm:$0xff]   ;;  %v1525_v38 = vld [vmem:[%s1641_s15 + $0x50] ss:$8 sps:$4 sm:$0xff]   ;;  %v1527_v40 = vld [vmem:[%s1641_s15 + $0x64] ss:$8 sps:$4 sm:$0xff]  }
  0x19   : > { %v1523_v37 = vld [vmem:[%s1641_s15 + $0xd4] ss:$8 sps:$4 sm:$0xff]   ;;  %v1526_v39 = vld [vmem:[%s1641_s15 + $0xd0] ss:$8 sps:$4 sm:$0xff]   ;;  %v1529_v41 = vld [vmem:[%s1641_s15 + $0xe4] ss:$8 sps:$4 sm:$0xff]  }
  0x1a   : > { %1330 = vmatpush3.bf16.msra.mxu0 %v1482_v7  ;;  %1446 = vmatpush3.bf16.msra.mxu1 %v1482_v7  ;;  %v1531_v42 = vld [vmem:[%s1641_s15 + $0x60] ss:$8 sps:$4 sm:$0xff]   ;;  %v1533_v44 = vld [vmem:[%s1641_s15 + $0x74] ss:$8 sps:$4 sm:$0xff]   ;;  %v1537_v46 = vld [vmem:[%s1641_s15 + $0x70] ss:$8 sps:$4 sm:$0xff]  }
  0x1b   : > { %1331 = vmatprep.subr.bf16.mxu0 %v1483_v8  ;;  %1439 = vmatprep.subr.bf16.mxu1 %v1483_v8  ;;  %v1532_v43 = vld [vmem:[%s1641_s15 + $0xe0] ss:$8 sps:$4 sm:$0xff]   ;;  %v1535_v45 = vld [vmem:[%s1641_s15 + $0xf4] ss:$8 sps:$4 sm:$0xff]   ;;  %v1538_v47 = vld [vmem:[%s1641_s15 + $0xf0] ss:$8 sps:$4 sm:$0xff]   ;;  %s1713_s15 = scalar_lea.vmem %s1822_s4, %s1322_s10 }
  0x1c   : > { %v1699_v51 = vld [vmem:[%s1820_s2] ss:$0 sm:$0xff] }
  0x1d   : > { %v1704_v55 = vld [vmem:[%s1821_s3] ss:$0 sm:$0xff] }
  0x1e   : > { %1332 = vmatpush3.bf16.msra.mxu0 %v1484_v9  ;;  %1447 = vmatpush3.bf16.msra.mxu1 %v1484_v9 }
  0x1f   : > { %1333 = vmatprep.subr.bf16.mxu0 %v1485_v10  ;;  %1440 = vmatprep.subr.bf16.mxu1 %v1485_v10 }
  0x22   : > { %1334 = vmatpush3.bf16.msra.mxu0 %v1486_v13  ;;  %1448 = vmatpush3.bf16.msra.mxu1 %v1486_v13 }
  0x23   : > { %1335 = vmatprep.subr.bf16.mxu0 %v1487_v14  ;;  %1441 = vmatprep.subr.bf16.mxu1 %v1487_v14 }
  0x26   : > { %1336 = vmatpush3.bf16.msra.mxu0 %v1488_v15  ;;  %1449 = vmatpush3.bf16.msra.mxu1 %v1488_v15 }
  0x27   : > { %1337 = vmatprep.subr.bf16.mxu0 %v1489_v16  ;;  %1442 = vmatprep.subr.bf16.mxu1 %v1489_v16 }
  0x2a   : > { %1338 = vmatpush3.bf16.msra.mxu0 %v1490_v17  ;;  %1450 = vmatpush3.bf16.msra.mxu1 %v1490_v17 }
  0x2d   : > { %730 = vmatmul.mubr.bf16.vlgmr.msra.gmra.mxu0 %v1491_v18  ;;  %794 = vmatmul.mubr.bf16.vlgmr.msra.gmra.mxu1 %v1494_v19 }
  0x2e   : > { %737 = vmatprep.mubr.bf16.mxu0 %v1497_v20  ;;  %801 = vmatprep.mubr.bf16.mxu1 %v1499_v21 }
  0x35   : > { %738 = vmatmul.mubr.bf16.gmra.mxu0 %v1501_v22  ;;  %802 = vmatmul.mubr.bf16.gmra.mxu1 %v1502_v23 }
  0x36   : > { %745 = vmatprep.mubr.bf16.mxu0 %v1503_v24  ;;  %809 = vmatprep.mubr.bf16.mxu1 %v1505_v25 }
  0x3d   : > { %746 = vmatmul.mubr.bf16.gmra.mxu0 %v1507_v26  ;;  %810 = vmatmul.mubr.bf16.gmra.mxu1 %v1508_v27 }
  0x3e   : > { %753 = vmatprep.mubr.bf16.mxu0 %v1509_v28  ;;  %817 = vmatprep.mubr.bf16.mxu1 %v1511_v29 }
  0x45   : > { %754 = vmatmul.mubr.bf16.gmra.mxu0 %v1513_v30  ;;  %818 = vmatmul.mubr.bf16.gmra.mxu1 %v1514_v31 }
  0x46   : > { %761 = vmatprep.mubr.bf16.mxu0 %v1515_v32  ;;  %825 = vmatprep.mubr.bf16.mxu1 %v1517_v33 }
  0x4d   : > { %762 = vmatmul.mubr.bf16.gmra.mxu0 %v1519_v34  ;;  %826 = vmatmul.mubr.bf16.gmra.mxu1 %v1520_v35 }
  0x4e   : > { %769 = vmatprep.mubr.bf16.mxu0 %v1521_v36  ;;  %833 = vmatprep.mubr.bf16.mxu1 %v1523_v37 }
  0x55   : > { %770 = vmatmul.mubr.bf16.gmra.mxu0 %v1525_v38  ;;  %834 = vmatmul.mubr.bf16.gmra.mxu1 %v1526_v39 }
  0x56   : > { %777 = vmatprep.mubr.bf16.mxu0 %v1527_v40  ;;  %841 = vmatprep.mubr.bf16.mxu1 %v1529_v41 }
  0x5d   : > { %778 = vmatmul.mubr.bf16.gmra.mxu0 %v1531_v42  ;;  %842 = vmatmul.mubr.bf16.gmra.mxu1 %v1532_v43 }
  0x5e   : > { %785 = vmatprep.mubr.bf16.mxu0 %v1533_v44  ;;  %849 = vmatprep.mubr.bf16.mxu1 %v1535_v45 }
  0x65   : > { %786 = vmatmul.mubr.bf16.gmra.mxu0 %v1537_v46  ;;  %850 = vmatmul.mubr.bf16.gmra.mxu1 %v1538_v47 }
  0xed   : > { %v1339_v48 = vpop.f32.mrf.mxu0  ;;  %v1387_v49 = vpop.f32.mrf.mxu1 }
  0xef   : > { %v1340_v50 = vpop.f32.mrf.mxu0  ;;  %v1388_v52 = vpop.f32.mrf.mxu1 }
  0xf0   : > { %v1341_v53 = vadd.f32 %v1340_v50, %v1339_v48  ;;  %v1389_v54 = vadd.f32 %v1388_v52, %v1387_v49 }
  0xf1   : > { %v1342_v56 = vpop.f32.mrf.mxu0  ;;  %v1390_v57 = vpop.f32.mrf.mxu1 }
  0xf2   : > { %v964_v58 = vadd.f32 %v1341_v53, %v1699_v51  ;;  %v980_v59 = vadd.f32 %v1389_v54, %v1699_v51 }
  0xf3   : > { %v1343_v60 = vpop.f32.mrf.mxu0  ;;  %v1391_v61 = vpop.f32.mrf.mxu1 }
  0xf4   : > { %vm996_vm0 = vcmp.gt.f32.partialorder %v964_v58, 0.0  ;;  %v1035_v62 = vmul.f32 %v1704_v55, %v964_v58  ;;  %vm1012_vm1 = vcmp.gt.f32.partialorder %v980_v59, 0.0  ;;  %v1051_v63 = vmul.f32 %v1704_v55, %v980_v59 }
  0xf5   : > { %v1344_v0 = vadd.f32 %v1343_v60, %v1342_v56  ;;  %v1392_v1 = vadd.f32 %v1391_v61, %v1390_v57  ;;  %v1345_v2 = vpop.f32.mrf.mxu0  ;;  %v1393_v3 = vpop.f32.mrf.mxu1 }
  0xf6   : > { %v1067_v4 = vsel %vm996_vm0, %v964_v58, %v1035_v62  ;;  %v1083_v5 = vsel %vm1012_vm1, %v980_v59, %v1051_v63 }
  0xf7   : > { %1099 = vst [vmem:[%s1713_s15] sm:$0xff] %v1067_v4  ;;  %1115 = vst [vmem:[%s1713_s15 + $0x80] sm:$0xff] %v1083_v5  ;;  %v965_v6 = vadd.f32 %v1344_v0, %v1699_v51  ;;  %v981_v7 = vadd.f32 %v1392_v1, %v1699_v51  ;;  %v1346_v8 = vpop.f32.mrf.mxu0  ;;  %v1394_v9 = vpop.f32.mrf.mxu1 }
  0xf8   : > { %v1347_v10 = vadd.f32 %v1346_v8, %v1345_v2  ;;  %v1395_v11 = vadd.f32 %v1394_v9, %v1393_v3 }
  0xf9   : > { %vm997_vm2 = vcmp.gt.f32.partialorder %v965_v6, 0.0  ;;  %v1036_v12 = vmul.f32 %v1704_v55, %v965_v6  ;;  %vm1013_vm3 = vcmp.gt.f32.partialorder %v981_v7, 0.0  ;;  %v1052_v13 = vmul.f32 %v1704_v55, %v981_v7  ;;  %v1348_v14 = vpop.f32.mrf.mxu0  ;;  %v1396_v15 = vpop.f32.mrf.mxu1 }
  0xfa   : > { %v966_v16 = vadd.f32 %v1347_v10, %v1699_v51  ;;  %v982_v17 = vadd.f32 %v1395_v11, %v1699_v51 }
  0xfb   : > { %v1068_v18 = vsel %vm997_vm2, %v965_v6, %v1036_v12  ;;  %v1084_v19 = vsel %vm1013_vm3, %v981_v7, %v1052_v13  ;;  %v1349_v20 = vpop.f32.mrf.mxu0  ;;  %v1397_v21 = vpop.f32.mrf.mxu1 }
  0xfc   : > { %1100 = vst [vmem:[%s1713_s15 + $0x8] sm:$0xff] %v1068_v18  ;;  %1116 = vst [vmem:[%s1713_s15 + $0x88] sm:$0xff] %v1084_v19  ;;  %vm998_vm4 = vcmp.gt.f32.partialorder %v966_v16, 0.0  ;;  %v1037_v22 = vmul.f32 %v1704_v55, %v966_v16  ;;  %vm1014_vm5 = vcmp.gt.f32.partialorder %v982_v17, 0.0  ;;  %v1053_v23 = vmul.f32 %v1704_v55, %v982_v17 }
  0xfd   : > { %v1350_v24 = vadd.f32 %v1349_v20, %v1348_v14  ;;  %v1398_v25 = vadd.f32 %v1397_v21, %v1396_v15  ;;  %v1351_v26 = vpop.f32.mrf.mxu0  ;;  %v1399_v27 = vpop.f32.mrf.mxu1 }
  0xfe   : > { %v1069_v28 = vsel %vm998_vm4, %v966_v16, %v1037_v22  ;;  %v1085_v29 = vsel %vm1014_vm5, %v982_v17, %v1053_v23 }
  0xff   : > { %1101 = vst [vmem:[%s1713_s15 + $0x10] sm:$0xff] %v1069_v28  ;;  %1117 = vst [vmem:[%s1713_s15 + $0x90] sm:$0xff] %v1085_v29  ;;  %v967_v30 = vadd.f32 %v1350_v24, %v1699_v51  ;;  %v983_v31 = vadd.f32 %v1398_v25, %v1699_v51  ;;  %v1352_v32 = vpop.f32.mrf.mxu0  ;;  %v1400_v33 = vpop.f32.mrf.mxu1 }
 0x100   : > { %v1353_v34 = vadd.f32 %v1352_v32, %v1351_v26  ;;  %v1401_v35 = vadd.f32 %v1400_v33, %v1399_v27 }
 0x101   : > { %vm999_vm6 = vcmp.gt.f32.partialorder %v967_v30, 0.0  ;;  %v1038_v36 = vmul.f32 %v1704_v55, %v967_v30  ;;  %vm1015_vm7 = vcmp.gt.f32.partialorder %v983_v31, 0.0  ;;  %v1054_v37 = vmul.f32 %v1704_v55, %v983_v31  ;;  %v1354_v38 = vpop.f32.mrf.mxu0  ;;  %v1402_v39 = vpop.f32.mrf.mxu1 }
 0x102   : > { %v968_v40 = vadd.f32 %v1353_v34, %v1699_v51  ;;  %v984_v41 = vadd.f32 %v1401_v35, %v1699_v51 }
 0x103   : > { %v1070_v42 = vsel %vm999_vm6, %v967_v30, %v1038_v36  ;;  %v1086_v43 = vsel %vm1015_vm7, %v983_v31, %v1054_v37  ;;  %v1355_v44 = vpop.f32.mrf.mxu0  ;;  %v1403_v45 = vpop.f32.mrf.mxu1 }
 0x104   : > { %1102 = vst [vmem:[%s1713_s15 + $0x18] sm:$0xff] %v1070_v42  ;;  %1118 = vst [vmem:[%s1713_s15 + $0x98] sm:$0xff] %v1086_v43  ;;  %vm1000_vm8 = vcmp.gt.f32.partialorder %v968_v40, 0.0  ;;  %v1039_v46 = vmul.f32 %v1704_v55, %v968_v40  ;;  %vm1016_vm9 = vcmp.gt.f32.partialorder %v984_v41, 0.0  ;;  %v1055_v47 = vmul.f32 %v1704_v55, %v984_v41 }
 0x105   : > { %v1356_v48 = vadd.f32 %v1355_v44, %v1354_v38  ;;  %v1404_v49 = vadd.f32 %v1403_v45, %v1402_v39  ;;  %v1357_v50 = vpop.f32.mrf.mxu0  ;;  %v1405_v52 = vpop.f32.mrf.mxu1 }
 0x106   : > { %v1071_v53 = vsel %vm1000_vm8, %v968_v40, %v1039_v46  ;;  %v1087_v54 = vsel %vm1016_vm9, %v984_v41, %v1055_v47 }
 0x107   : > { %1103 = vst [vmem:[%s1713_s15 + $0x20] sm:$0xff] %v1071_v53  ;;  %1119 = vst [vmem:[%s1713_s15 + $0xa0] sm:$0xff] %v1087_v54  ;;  %v969_v56 = vadd.f32 %v1356_v48, %v1699_v51  ;;  %v985_v57 = vadd.f32 %v1404_v49, %v1699_v51  ;;  %v1358_v58 = vpop.f32.mrf.mxu0  ;;  %v1406_v59 = vpop.f32.mrf.mxu1 }
 0x108   : > { %v1359_v60 = vadd.f32 %v1358_v58, %v1357_v50  ;;  %v1407_v61 = vadd.f32 %v1406_v59, %v1405_v52 }
 0x109   : > { %vm1001_vm10 = vcmp.gt.f32.partialorder %v969_v56, 0.0  ;;  %v1040_v62 = vmul.f32 %v1704_v55, %v969_v56  ;;  %vm1017_vm11 = vcmp.gt.f32.partialorder %v985_v57, 0.0  ;;  %v1056_v63 = vmul.f32 %v1704_v55, %v985_v57  ;;  %v1360_v0 = vpop.f32.mrf.mxu0  ;;  %v1408_v1 = vpop.f32.mrf.mxu1 }
 0x10a   : > { %v970_v2 = vadd.f32 %v1359_v60, %v1699_v51  ;;  %v986_v3 = vadd.f32 %v1407_v61, %v1699_v51 }
 0x10b   : > { %v1072_v4 = vsel %vm1001_vm10, %v969_v56, %v1040_v62  ;;  %v1088_v5 = vsel %vm1017_vm11, %v985_v57, %v1056_v63  ;;  %v1361_v6 = vpop.f32.mrf.mxu0  ;;  %v1409_v7 = vpop.f32.mrf.mxu1 }
 0x10c   : > { %1104 = vst [vmem:[%s1713_s15 + $0x28] sm:$0xff] %v1072_v4  ;;  %1120 = vst [vmem:[%s1713_s15 + $0xa8] sm:$0xff] %v1088_v5  ;;  %vm1002_vm12 = vcmp.gt.f32.partialorder %v970_v2, 0.0  ;;  %v1041_v8 = vmul.f32 %v1704_v55, %v970_v2  ;;  %vm1018_vm13 = vcmp.gt.f32.partialorder %v986_v3, 0.0  ;;  %v1057_v9 = vmul.f32 %v1704_v55, %v986_v3 }
 0x10d   : > { %v1362_v10 = vadd.f32 %v1361_v6, %v1360_v0  ;;  %v1410_v11 = vadd.f32 %v1409_v7, %v1408_v1  ;;  %v1363_v12 = vpop.f32.mrf.mxu0  ;;  %v1411_v13 = vpop.f32.mrf.mxu1 }
 0x10e   : > { %v1073_v14 = vsel %vm1002_vm12, %v970_v2, %v1041_v8  ;;  %v1089_v15 = vsel %vm1018_vm13, %v986_v3, %v1057_v9 }
 0x10f   : > { %1105 = vst [vmem:[%s1713_s15 + $0x30] sm:$0xff] %v1073_v14  ;;  %1121 = vst [vmem:[%s1713_s15 + $0xb0] sm:$0xff] %v1089_v15  ;;  %v971_v16 = vadd.f32 %v1362_v10, %v1699_v51  ;;  %v987_v17 = vadd.f32 %v1410_v11, %v1699_v51  ;;  %v1364_v18 = vpop.f32.mrf.mxu0  ;;  %v1412_v19 = vpop.f32.mrf.mxu1 }
 0x110   : > { %v1365_v20 = vadd.f32 %v1364_v18, %v1363_v12  ;;  %v1413_v21 = vadd.f32 %v1412_v19, %v1411_v13 }
 0x111   : > { %vm1003_vm14 = vcmp.gt.f32.partialorder %v971_v16, 0.0  ;;  %v1042_v22 = vmul.f32 %v1704_v55, %v971_v16  ;;  %vm1019_vm15 = vcmp.gt.f32.partialorder %v987_v17, 0.0  ;;  %v1058_v23 = vmul.f32 %v1704_v55, %v987_v17  ;;  %v1366_v24 = vpop.f32.mrf.mxu0  ;;  %v1414_v25 = vpop.f32.mrf.mxu1 }
 0x112   : > { %v972_v26 = vadd.f32 %v1365_v20, %v1699_v51  ;;  %v988_v27 = vadd.f32 %v1413_v21, %v1699_v51 }
 0x113   : > { %v1074_v28 = vsel %vm1003_vm14, %v971_v16, %v1042_v22  ;;  %v1090_v29 = vsel %vm1019_vm15, %v987_v17, %v1058_v23  ;;  %v1367_v30 = vpop.f32.mrf.mxu0  ;;  %v1415_v31 = vpop.f32.mrf.mxu1 }
 0x114   : > { %1106 = vst [vmem:[%s1713_s15 + $0x38] sm:$0xff] %v1074_v28  ;;  %1122 = vst [vmem:[%s1713_s15 + $0xb8] sm:$0xff] %v1090_v29  ;;  %vm1004_vm0 = vcmp.gt.f32.partialorder %v972_v26, 0.0  ;;  %v1043_v32 = vmul.f32 %v1704_v55, %v972_v26  ;;  %vm1020_vm1 = vcmp.gt.f32.partialorder %v988_v27, 0.0  ;;  %v1059_v33 = vmul.f32 %v1704_v55, %v988_v27 }
 0x115   : > { %v1368_v34 = vadd.f32 %v1367_v30, %v1366_v24  ;;  %v1416_v35 = vadd.f32 %v1415_v31, %v1414_v25  ;;  %v1369_v36 = vpop.f32.mrf.mxu0  ;;  %v1417_v37 = vpop.f32.mrf.mxu1 }
 0x116   : > { %v1075_v38 = vsel %vm1004_vm0, %v972_v26, %v1043_v32  ;;  %v1091_v39 = vsel %vm1020_vm1, %v988_v27, %v1059_v33 }
 0x117   : > { %1107 = vst [vmem:[%s1713_s15 + $0x40] sm:$0xff] %v1075_v38  ;;  %1123 = vst [vmem:[%s1713_s15 + $0xc0] sm:$0xff] %v1091_v39  ;;  %v973_v40 = vadd.f32 %v1368_v34, %v1699_v51  ;;  %v989_v41 = vadd.f32 %v1416_v35, %v1699_v51  ;;  %v1370_v42 = vpop.f32.mrf.mxu0  ;;  %v1418_v43 = vpop.f32.mrf.mxu1 }
 0x118   : > { %v1371_v44 = vadd.f32 %v1370_v42, %v1369_v36  ;;  %v1419_v45 = vadd.f32 %v1418_v43, %v1417_v37 }
 0x119   : > { %vm1005_vm2 = vcmp.gt.f32.partialorder %v973_v40, 0.0  ;;  %v1044_v46 = vmul.f32 %v1704_v55, %v973_v40  ;;  %vm1021_vm3 = vcmp.gt.f32.partialorder %v989_v41, 0.0  ;;  %v1060_v47 = vmul.f32 %v1704_v55, %v989_v41  ;;  %v1372_v48 = vpop.f32.mrf.mxu0  ;;  %v1420_v49 = vpop.f32.mrf.mxu1 }
 0x11a   : > { %v974_v50 = vadd.f32 %v1371_v44, %v1699_v51  ;;  %v990_v52 = vadd.f32 %v1419_v45, %v1699_v51 }
 0x11b   : > { %v1076_v53 = vsel %vm1005_vm2, %v973_v40, %v1044_v46  ;;  %v1092_v54 = vsel %vm1021_vm3, %v989_v41, %v1060_v47  ;;  %v1373_v56 = vpop.f32.mrf.mxu0  ;;  %v1421_v57 = vpop.f32.mrf.mxu1 }
 0x11c   : > { %1108 = vst [vmem:[%s1713_s15 + $0x48] sm:$0xff] %v1076_v53  ;;  %1124 = vst [vmem:[%s1713_s15 + $0xc8] sm:$0xff] %v1092_v54  ;;  %vm1006_vm4 = vcmp.gt.f32.partialorder %v974_v50, 0.0  ;;  %v1045_v58 = vmul.f32 %v1704_v55, %v974_v50  ;;  %vm1022_vm5 = vcmp.gt.f32.partialorder %v990_v52, 0.0  ;;  %v1061_v59 = vmul.f32 %v1704_v55, %v990_v52 }
 0x11d   : > { %v1374_v60 = vadd.f32 %v1373_v56, %v1372_v48  ;;  %v1422_v61 = vadd.f32 %v1421_v57, %v1420_v49  ;;  %v1375_v62 = vpop.f32.mrf.mxu0  ;;  %v1423_v63 = vpop.f32.mrf.mxu1 }
 0x11e   : > { %v1077_v0 = vsel %vm1006_vm4, %v974_v50, %v1045_v58  ;;  %v1093_v1 = vsel %vm1022_vm5, %v990_v52, %v1061_v59 }
 0x11f   : > { %1109 = vst [vmem:[%s1713_s15 + $0x50] sm:$0xff] %v1077_v0  ;;  %1125 = vst [vmem:[%s1713_s15 + $0xd0] sm:$0xff] %v1093_v1  ;;  %v975_v2 = vadd.f32 %v1374_v60, %v1699_v51  ;;  %v991_v3 = vadd.f32 %v1422_v61, %v1699_v51  ;;  %v1376_v4 = vpop.f32.mrf.mxu0  ;;  %v1424_v5 = vpop.f32.mrf.mxu1 }
 0x120   : > { %v1377_v6 = vadd.f32 %v1376_v4, %v1375_v62  ;;  %v1425_v7 = vadd.f32 %v1424_v5, %v1423_v63 }
 0x121   : > { %vm1007_vm6 = vcmp.gt.f32.partialorder %v975_v2, 0.0  ;;  %v1046_v8 = vmul.f32 %v1704_v55, %v975_v2  ;;  %vm1023_vm7 = vcmp.gt.f32.partialorder %v991_v3, 0.0  ;;  %v1062_v9 = vmul.f32 %v1704_v55, %v991_v3  ;;  %v1378_v10 = vpop.f32.mrf.mxu0  ;;  %v1426_v11 = vpop.f32.mrf.mxu1 }
 0x122   : > { %v976_v12 = vadd.f32 %v1377_v6, %v1699_v51  ;;  %v992_v13 = vadd.f32 %v1425_v7, %v1699_v51 }
 0x123   : > { %v1078_v14 = vsel %vm1007_vm6, %v975_v2, %v1046_v8  ;;  %v1094_v15 = vsel %vm1023_vm7, %v991_v3, %v1062_v9  ;;  %v1379_v16 = vpop.f32.mrf.mxu0  ;;  %v1427_v17 = vpop.f32.mrf.mxu1 }
 0x124   : > { %1110 = vst [vmem:[%s1713_s15 + $0x58] sm:$0xff] %v1078_v14  ;;  %1126 = vst [vmem:[%s1713_s15 + $0xd8] sm:$0xff] %v1094_v15  ;;  %vm1008_vm8 = vcmp.gt.f32.partialorder %v976_v12, 0.0  ;;  %v1047_v18 = vmul.f32 %v1704_v55, %v976_v12  ;;  %vm1024_vm9 = vcmp.gt.f32.partialorder %v992_v13, 0.0  ;;  %v1063_v19 = vmul.f32 %v1704_v55, %v992_v13 }
 0x125   : > { %v1380_v20 = vadd.f32 %v1379_v16, %v1378_v10  ;;  %v1428_v21 = vadd.f32 %v1427_v17, %v1426_v11  ;;  %v1381_v22 = vpop.f32.mrf.mxu0  ;;  %v1429_v23 = vpop.f32.mrf.mxu1 }
 0x126   : > { %v1079_v24 = vsel %vm1008_vm8, %v976_v12, %v1047_v18  ;;  %v1095_v25 = vsel %vm1024_vm9, %v992_v13, %v1063_v19 }
 0x127   : > { %1111 = vst [vmem:[%s1713_s15 + $0x60] sm:$0xff] %v1079_v24  ;;  %1127 = vst [vmem:[%s1713_s15 + $0xe0] sm:$0xff] %v1095_v25  ;;  %v977_v26 = vadd.f32 %v1380_v20, %v1699_v51  ;;  %v993_v27 = vadd.f32 %v1428_v21, %v1699_v51  ;;  %v1382_v28 = vpop.f32.mrf.mxu0  ;;  %v1430_v29 = vpop.f32.mrf.mxu1 }
 0x128   : > { %v1383_v30 = vadd.f32 %v1382_v28, %v1381_v22  ;;  %v1431_v31 = vadd.f32 %v1430_v29, %v1429_v23 }
 0x129   : > { %vm1009_vm10 = vcmp.gt.f32.partialorder %v977_v26, 0.0  ;;  %v1048_v32 = vmul.f32 %v1704_v55, %v977_v26  ;;  %vm1025_vm11 = vcmp.gt.f32.partialorder %v993_v27, 0.0  ;;  %v1064_v33 = vmul.f32 %v1704_v55, %v993_v27  ;;  %v1384_v34 = vpop.f32.mrf.mxu0  ;;  %v1432_v35 = vpop.f32.mrf.mxu1 }
 0x12a   : > { %v978_v36 = vadd.f32 %v1383_v30, %v1699_v51  ;;  %v994_v37 = vadd.f32 %v1431_v31, %v1699_v51 }
 0x12b   : > { %v1080_v38 = vsel %vm1009_vm10, %v977_v26, %v1048_v32  ;;  %v1096_v39 = vsel %vm1025_vm11, %v993_v27, %v1064_v33  ;;  %v1385_v40 = vpop.f32.mrf.mxu0  ;;  %v1433_v41 = vpop.f32.mrf.mxu1 }
 0x12c   : > { %1112 = vst [vmem:[%s1713_s15 + $0x68] sm:$0xff] %v1080_v38  ;;  %1128 = vst [vmem:[%s1713_s15 + $0xe8] sm:$0xff] %v1096_v39  ;;  %vm1010_vm12 = vcmp.gt.f32.partialorder %v978_v36, 0.0  ;;  %v1049_v42 = vmul.f32 %v1704_v55, %v978_v36  ;;  %vm1026_vm13 = vcmp.gt.f32.partialorder %v994_v37, 0.0  ;;  %v1065_v43 = vmul.f32 %v1704_v55, %v994_v37 }
 0x12d   : > { %v1386_v44 = vadd.f32 %v1385_v40, %v1384_v34  ;;  %v1434_v45 = vadd.f32 %v1433_v41, %v1432_v35 }
 0x12e   : > { %v1081_v46 = vsel %vm1010_vm12, %v978_v36, %v1049_v42  ;;  %v1097_v47 = vsel %vm1026_vm13, %v994_v37, %v1065_v43 }
 0x12f   : > { %1113 = vst [vmem:[%s1713_s15 + $0x70] sm:$0xff] %v1081_v46  ;;  %1129 = vst [vmem:[%s1713_s15 + $0xf0] sm:$0xff] %v1097_v47  ;;  %v979_v48 = vadd.f32 %v1386_v44, %v1699_v51  ;;  %v995_v49 = vadd.f32 %v1434_v45, %v1699_v51 }
 0x131   : > { %vm1011_vm14 = vcmp.gt.f32.partialorder %v979_v48, 0.0  ;;  %v1050_v50 = vmul.f32 %v1704_v55, %v979_v48  ;;  %vm1027_vm15 = vcmp.gt.f32.partialorder %v995_v49, 0.0  ;;  %v1066_v52 = vmul.f32 %v1704_v55, %v995_v49 }
 0x133   : > { %v1082_v53 = vsel %vm1011_vm14, %v979_v48, %v1050_v50  ;;  %v1098_v54 = vsel %vm1027_vm15, %v995_v49, %v1066_v52 }
 0x134   : > { %1114 = vst [vmem:[%s1713_s15 + $0x78] sm:$0xff] %v1082_v53  ;;  %1130 = vst [vmem:[%s1713_s15 + $0xf8] sm:$0xff] %v1098_v54 }
 0x135 PF: > { %s14_s17 = sadd.s32 1, %s1561_s17   ;;  %s1823_s15 = smov %s1557_s16 }
 0x136   : > { %p11_p5 = scmp.ge.s32.totalorder %s14_s17, 4   ;;  %s1824_s16 = smov %s1826_s18 }
 0x138   :  { %13 = sbr.rel (!%p11_p5) target bundleno = 2 (0x2), region = 83 }

</bundles_post_ra>
